<compile_context>
chip_gen: v7x
topology: tpu7x:2x2x1
jax: 0.10.0
libtpu: 0.0.40
codegen_flags: <defaults>
</compile_context>

<pallas_src>
import functools

import jax
import jax.numpy as jnp
from jax import lax
from jax.experimental import pallas as pl
from jax.experimental.pallas import tpu as pltpu

EPS = 1e-5  # nn.BatchNorm1d default eps


# ---------------------------------------------------------------------------
# In-kernel helpers
# ---------------------------------------------------------------------------
def _cond_gamma_beta(ct_ref, wcat_ref, bcat_ref, b_idx):
    """Fused conditional gamma/beta projection for batch element `b_idx`.

    ct_ref: (c_dim, B), wcat_ref: (2*Cin+2*H, c_dim), bcat_ref: (2*Cin+2*H, 1).
    Returns a (2*Cin + 2*H, 1) column: [gamma0; beta0; gamma1; beta1].
    """
    c_all = ct_ref[...]                                              # (c_dim, B)
    lane = lax.broadcasted_iota(jnp.int32, c_all.shape, 1)
    c_col = jnp.sum(jnp.where(lane == b_idx, c_all, 0.0),
                    axis=1, keepdims=True)                           # (c_dim, 1)
    return jnp.dot(wcat_ref[...], c_col,
                   preferred_element_type=jnp.float32) + bcat_ref[...]


def _net_tile(x_t, gb, w0_ref, b0_ref, m0_ref, r0_ref, cin):
    """net = fc_0(relu(cbn_0(x)))  for one (Cin, tT) token tile (NCL layout)."""
    gamma0 = gb[:cin]                                                # (Cin, 1)
    beta0 = gb[cin:2 * cin]                                          # (Cin, 1)
    h = jnp.maximum(gamma0 * ((x_t - m0_ref[...]) * r0_ref[...]) + beta0, 0.0)
    return jnp.dot(w0_ref[...], h,
                   preferred_element_type=jnp.float32) + b0_ref[...]  # (H, tT)


def _finalize_stats(mean_ref, rstd_ref, count):
    inv_n = jnp.float32(1.0 / count)
    m = mean_ref[...] * inv_n
    var = rstd_ref[...] * inv_n - m * m                              # biased variance
    mean_ref[...] = m
    rstd_ref[...] = lax.rsqrt(var + EPS)


# ---------------------------------------------------------------------------
# Pass 1: per-channel batch statistics of x
# ---------------------------------------------------------------------------
def _x_stats_kernel(count, x_ref, mean_ref, rstd_ref):
    b, t = pl.program_id(0), pl.program_id(1)
    first = jnp.logical_and(b == 0, t == 0)
    last = jnp.logical_and(b == pl.num_programs(0) - 1, t == pl.num_programs(1) - 1)

    @pl.when(first)
    def _():
        mean_ref[...] = jnp.zeros_like(mean_ref)
        rstd_ref[...] = jnp.zeros_like(rstd_ref)

    x_t = x_ref[...]                                                 # (Cin, tT)
    mean_ref[...] += jnp.sum(x_t, axis=1, keepdims=True)             # running sum
    rstd_ref[...] += jnp.sum(x_t * x_t, axis=1, keepdims=True)       # running sumsq

    @pl.when(last)
    def _():
        _finalize_stats(mean_ref, rstd_ref, count)


# ---------------------------------------------------------------------------
# Pass 2: per-channel batch statistics of net = fc_0(relu(cbn_0(x)))
# ---------------------------------------------------------------------------
def _net_stats_kernel(count, cin,
                      x_ref, ct_ref, wcat_ref, bcat_ref, w0_ref, b0_ref,
                      m0_ref, r0_ref,
                      mean_ref, rstd_ref):
    b, t = pl.program_id(0), pl.program_id(1)
    first = jnp.logical_and(b == 0, t == 0)
    last = jnp.logical_and(b == pl.num_programs(0) - 1, t == pl.num_programs(1) - 1)

    @pl.when(first)
    def _():
        mean_ref[...] = jnp.zeros_like(mean_ref)
        rstd_ref[...] = jnp.zeros_like(rstd_ref)

    gb = _cond_gamma_beta(ct_ref, wcat_ref, bcat_ref, b)
    net = _net_tile(x_ref[...], gb, w0_ref, b0_ref, m0_ref, r0_ref, cin)  # (H, tT)
    mean_ref[...] += jnp.sum(net, axis=1, keepdims=True)
    rstd_ref[...] += jnp.sum(net * net, axis=1, keepdims=True)

    @pl.when(last)
    def _():
        _finalize_stats(mean_ref, rstd_ref, count)


# ---------------------------------------------------------------------------
# Pass 3: apply the full residual block per token tile
# ---------------------------------------------------------------------------
def _apply_kernel(cin, size_h, has_shortcut, *refs):
    if has_shortcut:
        (x_ref, ct_ref, wcat_ref, bcat_ref, w0_ref, b0_ref, w1_ref, b1_ref, ws_ref,
         m0_ref, r0_ref, m1_ref, r1_ref, o_ref) = refs
    else:
        (x_ref, ct_ref, wcat_ref, bcat_ref, w0_ref, b0_ref, w1_ref, b1_ref,
         m0_ref, r0_ref, m1_ref, r1_ref, o_ref) = refs
        ws_ref = None

    b = pl.program_id(0)
    x_t = x_ref[...]                                                 # (Cin, tT)
    gb = _cond_gamma_beta(ct_ref, wcat_ref, bcat_ref, b)             # (2Cin+2H, 1)

    # cbn_0 -> relu -> fc_0  (recomputed; intermediates never touch HBM)
    net = _net_tile(x_t, gb, w0_ref, b0_ref, m0_ref, r0_ref, cin)    # (H, tT)

    # cbn_1 -> relu -> fc_1
    gamma1 = gb[2 * cin:2 * cin + size_h]
    beta1 = gb[2 * cin + size_h:]
    h1 = jnp.maximum(gamma1 * ((net - m1_ref[...]) * r1_ref[...]) + beta1, 0.0)
    dx = jnp.dot(w1_ref[...], h1,
                 preferred_element_type=jnp.float32) + b1_ref[...]   # (Cout, tT)

    if has_shortcut:
        x_s = jnp.dot(ws_ref[...], x_t, preferred_element_type=jnp.float32)
    else:
        x_s = x_t
    o_ref[...] = x_s + dx


# ---------------------------------------------------------------------------
# Wrapper
# ---------------------------------------------------------------------------
def _pick_tile(T):
    if T % 128 == 0:
        tT = min(T, 512)
        while T % tT:
            tT //= 2
        return tT
    return T  # full-extent block (valid even if not a multiple of 128)


def _full_spec(shape):
    n = len(shape)
    return pl.BlockSpec(shape, lambda *idx: (0,) * n)


def _vmem_limit_bytes(tT, cin, size_h, cout, c_dim, B):
    tiles = 4 * tT * 2 * (cin + cout + size_h)            # double-buffered tiles + temps
    weights = 4 * ((2 * cin + 2 * size_h) * (c_dim + 1) + size_h * (cin + 1)
                   + cout * (size_h + 1) + cout * cin + c_dim * B
                   + 2 * cin + 2 * size_h)
    est = tiles + weights + (2 << 20)                      # headroom for internal scratch
    return int(min(max(est, 4 << 20), 32 << 20))


def cresnet_block_conv1d(x, c, params):
    """x: (B, C_in, T) PyTorch NCL, c: (B, c_dim).  Returns (B, C_out, T)."""
    B, Cin, T = x.shape
    c_dim = c.shape[1]
    H = params["w0"].shape[0]
    Cout = params["w1"].shape[0]
    has_shortcut = params["ws"] is not None

    tT = _pick_tile(T)
    nT = T // tT
    grid = (B, nT)
    count = B * T
    vmem_limit = _vmem_limit_bytes(tT, Cin, H, Cout, c_dim, B)

    # Tiny host-side packing (no activation-sized work): fused gamma/beta weights,
    # transposed latent code, column-shaped biases.  All weights stay (out, in).
    cT = jnp.transpose(c)                                                  # (c_dim, B)
    wcat = jnp.concatenate([params["wg0"], params["wb0"],
                            params["wg1"], params["wb1"]], axis=0)         # (2Cin+2H, c_dim)
    bcat = jnp.concatenate([params["bg0"], params["bb0"],
                            params["bg1"], params["bb1"]], axis=0)[:, None]
    w0, b0 = params["w0"], params["b0"][:, None]                           # (H,Cin), (H,1)
    w1, b1 = params["w1"], params["b1"][:, None]                           # (Cout,H), (Cout,1)

    x_spec = pl.BlockSpec((None, Cin, tT), lambda b, t: (b, 0, t))
    stat_out = lambda C: pl.BlockSpec((C, 1), lambda b, t: (0, 0))

    reduce_params = pltpu.CompilerParams(
        dimension_semantics=("arbitrary", "arbitrary"), vmem_limit_bytes=vmem_limit)
    parallel_params = pltpu.CompilerParams(
        dimension_semantics=("parallel", "parallel"), vmem_limit_bytes=vmem_limit)

    # --- pass 1: stats of x -------------------------------------------------
    mean0, rstd0 = pl.pallas_call(
        functools.partial(_x_stats_kernel, count),
        grid=grid,
        in_specs=[x_spec],
        out_specs=(stat_out(Cin), stat_out(Cin)),
        out_shape=(jax.ShapeDtypeStruct((Cin, 1), jnp.float32),
                   jax.ShapeDtypeStruct((Cin, 1), jnp.float32)),
        compiler_params=reduce_params,
        cost_estimate=pl.CostEstimate(flops=3 * count * Cin, transcendentals=Cin,
                                      bytes_accessed=4 * count * Cin),
    )(x)

    # --- pass 2: stats of net = fc_0(relu(cbn_0(x))) ------------------------
    mean1, rstd1 = pl.pallas_call(
        functools.partial(_net_stats_kernel, count, Cin),
        grid=grid,
        in_specs=[x_spec, _full_spec(cT.shape), _full_spec(wcat.shape),
                  _full_spec(bcat.shape), _full_spec(w0.shape), _full_spec(b0.shape),
                  _full_spec((Cin, 1)), _full_spec((Cin, 1))],
        out_specs=(stat_out(H), stat_out(H)),
        out_shape=(jax.ShapeDtypeStruct((H, 1), jnp.float32),
                   jax.ShapeDtypeStruct((H, 1), jnp.float32)),
        compiler_params=reduce_params,
        cost_estimate=pl.CostEstimate(flops=2 * count * Cin * H + 8 * count * Cin,
                                      transcendentals=H,
                                      bytes_accessed=4 * count * Cin),
    )(x, cT, wcat, bcat, w0, b0, mean0, rstd0)

    # --- pass 3: apply the full block ---------------------------------------
    ins = [x, cT, wcat, bcat, w0, b0, w1, b1]
    specs = [x_spec, _full_spec(cT.shape), _full_spec(wcat.shape), _full_spec(bcat.shape),
             _full_spec(w0.shape), _full_spec(b0.shape),
             _full_spec(w1.shape), _full_spec(b1.shape)]
    if has_shortcut:
        ins.append(params["ws"])
        specs.append(_full_spec(params["ws"].shape))
    ins += [mean0, rstd0, mean1, rstd1]
    specs += [_full_spec((Cin, 1)), _full_spec((Cin, 1)),
              _full_spec((H, 1)), _full_spec((H, 1))]

    flops3 = 2 * count * (Cin * H + H * Cout + (Cin * Cout if has_shortcut else 0)) \
        + 8 * count * (Cin + H)
    out = pl.pallas_call(
        functools.partial(_apply_kernel, Cin, H, has_shortcut),
        grid=grid,
        in_specs=specs,
        out_specs=pl.BlockSpec((None, Cout, tT), lambda b, t: (b, 0, t)),
        out_shape=jax.ShapeDtypeStruct((B, Cout, T), jnp.float32),
        compiler_params=parallel_params,
        cost_estimate=pl.CostEstimate(flops=flops3, transcendentals=0,
                                      bytes_accessed=4 * count * (Cin + Cout)),
    )(*ins)
    return out


# ---------------------------------------------------------------------------
# Synthetic parameters (PyTorch-native (out, in) layout) and pure-JAX reference
# ---------------------------------------------------------------------------
def init_params(key, c_dim, size_in, size_h, size_out):
    """Deterministic synthetic parameters (PyTorch layouts, squeezed conv kernels).

    The module's reset_parameters zeros/ones init is degenerate, so small random
    values are used to exercise the kernel non-trivially.
    """
    ks = jax.random.split(key, 13)
    w = lambda k, shape: (0.1 * jax.random.normal(k, shape)).astype(jnp.float32)
    return dict(
        wg0=w(ks[0], (size_in, c_dim)), bg0=w(ks[1], (size_in,)),
        wb0=w(ks[2], (size_in, c_dim)), bb0=w(ks[3], (size_in,)),
        wg1=w(ks[4], (size_h, c_dim)), bg1=w(ks[5], (size_h,)),
        wb1=w(ks[6], (size_h, c_dim)), bb1=w(ks[7], (size_h,)),
        w0=w(ks[8], (size_h, size_in)), b0=w(ks[9], (size_h,)),
        w1=w(ks[10], (size_out, size_h)), b1=w(ks[11], (size_out,)),
        ws=(w(ks[12], (size_out, size_in)) if size_in != size_out else None),
    )


def reference(x, c, params):
    """Pure-JAX reference of the PyTorch forward (train-mode BN), NCL layout."""
    def conv1x1(v, w, bias=None):
        y = jnp.einsum("oc,bct->bot", w, v)
        if bias is not None:
            y = y + bias[None, :, None]
        return y

    def cbn(v, wg, bg, wb, bb):
        gamma = (c @ wg.T + bg)[:, :, None]
        beta = (c @ wb.T + bb)[:, :, None]
        mean = jnp.mean(v, axis=(0, 2), keepdims=True)
        var = jnp.mean((v - mean) ** 2, axis=(0, 2), keepdims=True)
        return gamma * (v - mean) * lax.rsqrt(var + EPS) + beta

    h = jax.nn.relu(cbn(x, params["wg0"], params["bg0"], params["wb0"], params["bb0"]))
    net = conv1x1(h, params["w0"], params["b0"])
    h1 = jax.nn.relu(cbn(net, params["wg1"], params["bg1"], params["wb1"], params["bb1"]))
    dx = conv1x1(h1, params["w1"], params["b1"])
    x_s = conv1x1(x, params["ws"]) if params["ws"] is not None else x
    return x_s + dx


if __name__ == "__main__":
    key = jax.random.PRNGKey(0)

    # Case 1: with shortcut (size_in != size_out), multiple token tiles.
    B, c_dim, size_in, size_h, size_out, T = 2, 16, 32, 24, 40, 1024
    k1, k2, k3, k4, k5, k6 = jax.random.split(key, 6)
    x = jax.random.normal(k1, (B, size_in, T), jnp.float32)
    c = jax.random.normal(k2, (B, c_dim), jnp.float32)
    params = init_params(k3, c_dim, size_in, size_h, size_out)
    out = jax.block_until_ready(cresnet_block_conv1d(x, c, params))
    ref = reference(x, c, params)
    assert out.shape == (B, size_out, T), out.shape
    err = float(jnp.max(jnp.abs(out - ref)))
    assert jnp.allclose(out, ref, atol=1e-4, rtol=1e-4), f"max abs err {err}"

    # Case 2: identity shortcut (size_in == size_out).
    size_out2, T2 = size_in, 128
    x2 = jax.random.normal(k4, (B, size_in, T2), jnp.float32)
    c2 = jax.random.normal(k5, (B, c_dim), jnp.float32)
    params2 = init_params(k6, c_dim, size_in, size_h, size_out2)
    out2 = jax.block_until_ready(cresnet_block_conv1d(x2, c2, params2))
    ref2 = reference(x2, c2, params2)
    assert out2.shape == (B, size_out2, T2), out2.shape
    err2 = float(jnp.max(jnp.abs(out2 - ref2)))
    assert jnp.allclose(out2, ref2, atol=1e-4, rtol=1e-4), f"max abs err {err2}"

    print("KERNEL_OK")
</pallas_src>

<mosaic_0001>
module attributes {stable_mosaic.version = 11 : i64} {
  func.func @_x_stats_kernel(%arg0: i32, %arg1: i32, %arg2: memref<1x32x512xf32, #tpu.memory_space<vmem>>, %arg3: memref<32x1xf32, #tpu.memory_space<vmem>>, %arg4: memref<32x1xf32, #tpu.memory_space<vmem>>) attributes {dimension_semantics = [#tpu.dimension_semantics<arbitrary>, #tpu.dimension_semantics<arbitrary>], iteration_bounds = array<i64: 2, 2>, scalar_prefetch = 0 : i64, scratch_operands = 0 : i64, tpu.core_type = #tpu.core_type<tc>, window_params = [{transform_indices = @transform_0, window_bounds = array<i64: 1, 32, 512>}, {pipeline_mode = #tpu.pipeline_mode<synchronous>, transform_indices = @transform_1, window_bounds = array<i64: 32, 1>}, {pipeline_mode = #tpu.pipeline_mode<synchronous>, transform_indices = @transform_2, window_bounds = array<i64: 32, 1>}]} {
    %c0_i32 = arith.constant 0 : i32
    %0 = arith.cmpi eq, %arg0, %c0_i32 : i32
    %c0_i32_0 = arith.constant 0 : i32
    %1 = arith.cmpi eq, %arg1, %c0_i32_0 : i32
    %2 = arith.andi %0, %1 : i1
    %c1_i32 = arith.constant 1 : i32
    %3 = arith.cmpi eq, %arg0, %c1_i32 : i32
    %c1_i32_1 = arith.constant 1 : i32
    %4 = arith.cmpi eq, %arg1, %c1_i32_1 : i32
    %5 = arith.andi %3, %4 : i1
    %6 = arith.extui %2 : i1 to i32
    %c0_i32_2 = arith.constant 0 : i32
    %7 = arith.cmpi ne, %6, %c0_i32_2 : i32
    scf.if %7 {
      %cst_15 = arith.constant 0.000000e+00 : f32
      %23 = vector.broadcast %cst_15 : f32 to vector<32x1xf32>
      %c0_16 = arith.constant 0 : index
      %c0_17 = arith.constant 0 : index
      %24 = vector.load %arg3[%c0_16, %c0_17] : memref<32x1xf32, #tpu.memory_space<vmem>>, vector<32x1xf32>
      tpu.vector_store %arg3[%c0_16, %c0_17], %23 {strides = array<i32>} : memref<32x1xf32, #tpu.memory_space<vmem>>, vector<32x1xf32>,
      %cst_18 = arith.constant 0.000000e+00 : f32
      %25 = vector.broadcast %cst_18 : f32 to vector<32x1xf32>
      %c0_19 = arith.constant 0 : index
      %c0_20 = arith.constant 0 : index
      %26 = vector.load %arg4[%c0_19, %c0_20] : memref<32x1xf32, #tpu.memory_space<vmem>>, vector<32x1xf32>
      tpu.vector_store %arg4[%c0_19, %c0_20], %25 {strides = array<i32>} : memref<32x1xf32, #tpu.memory_space<vmem>>, vector<32x1xf32>,
    } else {
    }
    %c0 = arith.constant 0 : index
    %c0_3 = arith.constant 0 : index
    %c0_4 = arith.constant 0 : index
    %8 = vector.load %arg2[%c0, %c0_3, %c0_4] : memref<1x32x512xf32, #tpu.memory_space<vmem>>, vector<1x32x512xf32>
    %9 = vector.shape_cast %8 : vector<1x32x512xf32> to vector<32x512xf32>
    %c0_5 = arith.constant 0 : index
    %c0_6 = arith.constant 0 : index
    %10 = vector.load %arg3[%c0_5, %c0_6] : memref<32x1xf32, #tpu.memory_space<vmem>>, vector<32x1xf32>
    %cst = arith.constant dense<0.000000e+00> : vector<32xf32>
    %11 = vector.multi_reduction <add>, %9, %cst [1] : vector<32x512xf32> to vector<32xf32>
    %12 = vector.shape_cast %11 : vector<32xf32> to vector<32x1xf32>
    %13 = arith.addf %10, %12 : vector<32x1xf32>
    %c0_7 = arith.constant 0 : index
    %c0_8 = arith.constant 0 : index
    %14 = vector.load %arg3[%c0_7, %c0_8] : memref<32x1xf32, #tpu.memory_space<vmem>>, vector<32x1xf32>
    tpu.vector_store %arg3[%c0_7, %c0_8], %13 {strides = array<i32>} : memref<32x1xf32, #tpu.memory_space<vmem>>, vector<32x1xf32>,
    %c0_9 = arith.constant 0 : index
    %c0_10 = arith.constant 0 : index
    %15 = vector.load %arg4[%c0_9, %c0_10] : memref<32x1xf32, #tpu.memory_space<vmem>>, vector<32x1xf32>
    %16 = arith.mulf %9, %9 : vector<32x512xf32>
    %cst_11 = arith.constant dense<0.000000e+00> : vector<32xf32>
    %17 = vector.multi_reduction <add>, %16, %cst_11 [1] : vector<32x512xf32> to vector<32xf32>
    %18 = vector.shape_cast %17 : vector<32xf32> to vector<32x1xf32>
    %19 = arith.addf %15, %18 : vector<32x1xf32>
    %c0_12 = arith.constant 0 : index
    %c0_13 = arith.constant 0 : index
    %20 = vector.load %arg4[%c0_12, %c0_13] : memref<32x1xf32, #tpu.memory_space<vmem>>, vector<32x1xf32>
    tpu.vector_store %arg4[%c0_12, %c0_13], %19 {strides = array<i32>} : memref<32x1xf32, #tpu.memory_space<vmem>>, vector<32x1xf32>,
    %21 = arith.extui %5 : i1 to i32
    %c0_i32_14 = arith.constant 0 : i32
    %22 = arith.cmpi ne, %21, %c0_i32_14 : i32
    scf.if %22 {
      %c0_15 = arith.constant 0 : index
      %c0_16 = arith.constant 0 : index
      %23 = vector.load %arg3[%c0_15, %c0_16] : memref<32x1xf32, #tpu.memory_space<vmem>>, vector<32x1xf32>
      %cst_17 = arith.constant 4.8828125E-4 : f32
      %24 = vector.broadcast %cst_17 : f32 to vector<32x1xf32>
      %25 = arith.mulf %23, %24 : vector<32x1xf32>
      %c0_18 = arith.constant 0 : index
      %c0_19 = arith.constant 0 : index
      %26 = vector.load %arg4[%c0_18, %c0_19] : memref<32x1xf32, #tpu.memory_space<vmem>>, vector<32x1xf32>
      %cst_20 = arith.constant 4.8828125E-4 : f32
      %27 = vector.broadcast %cst_20 : f32 to vector<32x1xf32>
      %28 = arith.mulf %26, %27 : vector<32x1xf32>
      %29 = arith.mulf %25, %25 : vector<32x1xf32>
      %30 = arith.subf %28, %29 : vector<32x1xf32>
      %c0_21 = arith.constant 0 : index
      %c0_22 = arith.constant 0 : index
      %31 = vector.load %arg3[%c0_21, %c0_22] : memref<32x1xf32, #tpu.memory_space<vmem>>, vector<32x1xf32>
      tpu.vector_store %arg3[%c0_21, %c0_22], %25 {strides = array<i32>} : memref<32x1xf32, #tpu.memory_space<vmem>>, vector<32x1xf32>,
      %cst_23 = arith.constant 9.99999974E-6 : f32
      %32 = vector.broadcast %cst_23 : f32 to vector<32x1xf32>
      %33 = arith.addf %30, %32 : vector<32x1xf32>
      %34 = math.rsqrt %33 : vector<32x1xf32>
      %c0_24 = arith.constant 0 : index
      %c0_25 = arith.constant 0 : index
      %35 = vector.load %arg4[%c0_24, %c0_25] : memref<32x1xf32, #tpu.memory_space<vmem>>, vector<32x1xf32>
      tpu.vector_store %arg4[%c0_24, %c0_25], %34 {strides = array<i32>} : memref<32x1xf32, #tpu.memory_space<vmem>>, vector<32x1xf32>,
    } else {
    }
    return
  }
  func.func @transform_0(%arg0: i32, %arg1: i32) -> (i32, i32, i32) {
    %c0_i32 = arith.constant 0 : i32
    %c0_i32_0 = arith.constant 0 : i32
    return %arg0, %c0_i32, %arg1 : i32, i32, i32
  }
  func.func @transform_1(%arg0: i32, %arg1: i32) -> (i32, i32) {
    %c0_i32 = arith.constant 0 : i32
    %c0_i32_0 = arith.constant 0 : i32
    %c0_i32_1 = arith.constant 0 : i32
    return %c0_i32, %c0_i32_0 : i32, i32
  }
  func.func @transform_2(%arg0: i32, %arg1: i32) -> (i32, i32) {
    %c0_i32 = arith.constant 0 : i32
    %c0_i32_0 = arith.constant 0 : i32
    %c0_i32_1 = arith.constant 0 : i32
    return %c0_i32, %c0_i32_0 : i32, i32
  }
}

</mosaic_0001>

<bundles_post_ra>
// kernel: tpu_custom_call.1
= control target key start
LH: loop header
LB: loop body
LE: loop exit
PB: predicated region body
PF: predicated region fallthrough
CT: control target
= control target key end

     0   :  { %8 = vsyncpa [#allocation3], 0  ;;  %s902_s0 = inlined_call_operand.hbm [shape: f32[2,32,1024], index: 0, kind: input, shape index: {}]   ;;  %s903_s1 = inlined_call_operand.vmem [shape: f32[32,1], index: 1, kind: output, shape index: {0}]   ;;  %s904_s2 = inlined_call_operand.vmem [shape: f32[32,1], index: 2, kind: output, shape index: {1}]  }
   0x1   :  { %10 = vsyncpa [#allocation3 + $0x1], 0  ;;  %s594_s9 = smov 0   ;;  %s596_s10 = smov 0  }
   0x2   :  { %s598_s11 = smov 0   ;;  %s600_s12 = smov 0  }
   0x3   :  { %s602_s13 = smov 0   ;;  %s604_s14 = smov 0  }
   0x4   :  { %s606_s15 = smov 0   ;;  %s608_s16 = smov 0  }
   0x5 LB: > { %s382_s17 = sadd.s32 4294967295, %s572_s16   ;;  %s25_s18 = sadd.s32 1, %s564_s14  ;;  %s572_s16 = sphi %s608_s16, %s16_s16   ;;  %s568_s15 = sphi %s606_s15, %s915_s15   ;;  %s564_s14 = sphi %s604_s14, %s914_s14   ;;  %s560_s13 = sphi %s602_s13, %s913_s13   ;;  %s556_s12 = sphi %s600_s12, %s912_s12   ;;  %s552_s11 = sphi %s598_s11, %s911_s11   ;;  %s548_s10 = sphi %s596_s10, %s910_s10   ;;  %s544_s9 = sphi %s594_s9, %s909_s9  }
   0x6   : > { %p26_p0 = scmp.ge.s32.totalorder %s25_s18, 2  ;;  %s28_s19 = sadd.s32 1, %s568_s15 }
   0x7   : > { %s37_s20 = sadd.s32 1, %s552_s11  ;;  %p44_p1 = scmp.ne.s32.totalorder %s552_s11, %s548_s10 }
   0x8   : > { %s917_s18 = smov (%p26_p0, %s25_s18), 0  ;;  %s919_s19 = smov (!%p26_p0, %s28_s19), %s568_s15 }
   0x9   : > { %s33_s21 = ssub.s32 %s564_s14, %s917_s18  ;;  %p45_p2 = scmp.eq.s32.totalorder %s572_s16, 0 }
   0xa   : > { %p30_p3 = scmp.ge.s32.totalorder %s919_s19, 2  ;;  %p50_p4 = scmp.ne.s32.totalorder %s548_s10, %s544_s9 }
   0xb   : > { %p645_p5 = por %p45_p2, %p44_p1  ;;  %p51_p6 = scmp.eq.s32.totalorder %s382_s17, 0 }
   0xc   : > { %s921_s19 = smov (%p30_p3, %s919_s19), 0  ;;  %p399_p8 = scmp.lt.s32.totalorder %s572_s16, 4 }
   0xd   : > { %p651_p7 = por %p51_p6, %p50_p4  ;;  %s32_s24 = ssub.s32 %s568_s15, %s921_s19 }
   0xe   : > { %s34_s25 = sor.u32 %s33_s21, %s32_s24  ;;  %s116_s26 = sand.u32 1, %s552_s11  }
   0xf   : > { %p35_p9 = scmp.eq.s32.totalorder %s34_s25, 0  ;;  %s385_s27 = sshll.u32 %s116_s26, 7 }
  0x10   : > { %s386_s28 = sshll.u32 %s564_s14, 2  ;;  %s387_s30 = sshll.u32 %s568_s15, 5 }
  0x11   : > { %s661_s29 = scalar_select %p35_p9, %s552_s11, %s37_s20  }
  0x12   : > { %s126_s3 = sadd.s32 %s387_s30, %s386_s28  ;;  %s120_s4 = scalar_lea.vmem [#allocation2], %s385_s27 }
  0x13   : > { %s129_s5 = sshll.u32 %s120_s4, 4  ;;  %s388_s6 = sshll.u32 %s126_s3, 7  ;;  %s664_s5 = int_to_ptr.vmem [resolvable:$true] %s129_s5 }
  0x14   : > { %s669_s9 = scalar_lea.hbm %s902_s0, %s388_s6  ;;  %p675_p10 = pnand %p399_p8, %p645_p5 }
  0x15   : > { %s679_s20 = scalar_lea.sflag [#allocation3], %s116_s26  ;;  %s476_s21 = scalar_lea.hbm %s669_s9, 2048 }
  0x16   : > { %p477_p11 = scmp.ne.s32.totalorder %s669_s9, %s476_s21  ;;  %p478_p12 = pneg %p675_p10 }
  0x17   : > { %s481_s25 = scalar_lea.hbm %s902_s0, 8192  ;;  %p482_p1 = scmp.lt.u32.totalorder %s669_s9, %s902_s0 }
  0x18   : > { %p479_p13 = pnand %p478_p12, %p477_p11  ;;  %p483_p2 = scmp.lt.u32.totalorder %s481_s25, %s476_s21 }
  0x19   : > { %p485_p4 = scmp.lt.u32.totalorder %s476_s21, %s669_s9 }
  0x1a   : > { %p480_p0 = pneg %p479_p13  ;;  %p484_p3 = por %p483_p2, %p482_p1 }
  0x1c   : > { %p486_p5 = por %p485_p4, %p484_p3 }
  0x1e   : > { %p487_p6 = pnand %p486_p5, %p480_p0 }
  0x20   : > { %490 = shalt.err (!%p487_p6)
}
  0x21   : > { %s491_s26 = scalar_lea.vmem %s664_s5, 2048  ;;  %s574_s30 = smov [#allocation2]  }
  0x22   : > { %p492_p8 = scmp.ne.s32.totalorder %s664_s5, %s491_s26  ;;  %s496_s3 = sshll.u32 %s574_s30, 4  ;;  %s497_s3 = int_to_ptr.vmem [resolvable:$false] %s496_s3 }
  0x23   : > { %s498_s4 = scalar_lea.vmem %s497_s3, 4096  ;;  %p499_p13 = scmp.lt.s32.totalorder %s664_s5, %s497_s3 }
  0x24   : > { %p494_p9 = pnand %p492_p8, %p478_p12  ;;  %p500_p1 = scmp.lt.s32.totalorder %s498_s4, %s491_s26 }
  0x26   : > { %p495_p11 = pneg %p494_p9  ;;  %p501_p2 = por %p500_p1, %p499_p13 }
  0x28   : > { %p502_p3 = pnand %p501_p2, %p495_p11 }
  0x2a   : > { %505 = shalt.err (!%p502_p3)
}
  0x2b   : > { %s575_s6 = smov 1024   ;;  %s576_s7 = smov 512  }
  0x2c   : > { %s577_s8 = smov 32   ;;  %p389_p12 = scmp.ge.s32.totalorder %s572_s16, 1 }
  0x2d   : > { %398 = dma.hbm_to_vmem [thread:$0]  (!%p675_p10), %s669_s9, 2048, %s664_s5, %s679_s20, %s575_s6, %s576_s7, %s577_s8  }
  0x2e   : > { %p137_p0 = scmp.lt.s32.totalorder %s572_s16, 5 }
  0x30   : > { %p138_p4 = pnand %p389_p12, %p137_p0 }
  0x31   : > { %s143_s21 = sand.u32 (!%p138_p4), 1, %s548_s10  }
  0x32   : > { %141 = sbr.rel (%p138_p4) target bundleno = 260 (0x104), region = 24  ;;  %s390_s22 = sshll.u32 (!%p138_p4), %s143_s21, 7 }
  0x33   : > { %s144_s24 = scalar_lea.sflag (!%p138_p4), [#allocation3], %s143_s21  ;;  %s710_s25 = scalar_lea.vmem (!%p138_p4), [#allocation2], %s390_s22 }
  0x39   : > { %539 = dma.done.wait (%p651_p7), %s144_s24, 2048  }
  0x3a   : > { %541 = vsyncadd (%p651_p7), %s144_s24, 4294965248  ;;  %p164_p10 = scmp.eq.s32.totalorder %s560_s13, 0  ;;  %p165_p5 = scmp.eq.s32.totalorder %s556_s12, 0 }
  0x3b   : > { %p168_p6 = scmp.eq.s32.totalorder %s560_s13, 1  ;;  %p169_p8 = scmp.eq.s32.totalorder %s556_s12, 1 }
  0x3c   : > { %p166_p9 = pnand %p165_p5, %p164_p10 }
  0x3d   : > { %p720_p11 = pnand %p169_p8, %p168_p6  ;;  %vm174_vm0 = vcmask (!%p166_p9), 7168   ;;  %v578_v0 = vmov (!%p166_p9), 0.0  }
  0x3e   : > { %173 = sbr.rel (%p166_p9) target bundleno = 69 (0x45), region = 32  ;;  %175 = vst.msk [vmem:[%s903_s1] sm:$0xff] (!%p166_p9), %vm174_vm0, %v578_v0  ;;  %176 = vst.msk [vmem:[%s903_s1 + $0x8] sm:$0xff] (!%p166_p9), %vm174_vm0, %v578_v0 }
  0x3f   : > { %177 = vst.msk [vmem:[%s903_s1 + $0x10] sm:$0xff] (!%p166_p9), %vm174_vm0, %v578_v0  ;;  %178 = vst.msk [vmem:[%s903_s1 + $0x18] sm:$0xff] (!%p166_p9), %vm174_vm0, %v578_v0 }
  0x40   : > { %179 = vst.msk [vmem:[%s904_s2] sm:$0xff] (!%p166_p9), %vm174_vm0, %v578_v0  ;;  %180 = vst.msk [vmem:[%s904_s2 + $0x8] sm:$0xff] (!%p166_p9), %vm174_vm0, %v578_v0 }
  0x41   : > { %181 = vst.msk [vmem:[%s904_s2 + $0x10] sm:$0xff] (!%p166_p9), %vm174_vm0, %v578_v0  ;;  %182 = vst.msk [vmem:[%s904_s2 + $0x18] sm:$0xff] (!%p166_p9), %vm174_vm0, %v578_v0 }
  0x45 PF: > { %v191_v1 = vld [vmem:[%s710_s25 + $0x40] sm:$0xff]  ;;  %v192_v2 = vld [vmem:[%s710_s25 + $0x48] sm:$0xff]  ;;  %v193_v3 = vld [vmem:[%s710_s25 + $0x50] sm:$0xff]  ;;  %vm227_vm1 = vcmask 7168  }
  0x46   : > { %v213_v4 = vadd.f32 %v192_v2, %v191_v1  ;;  %v244_v5 = vmul.f32 %v191_v1, %v191_v1  ;;  %v183_v6 = vld [vmem:[%s710_s25] sm:$0xff]  ;;  %v184_v7 = vld [vmem:[%s710_s25 + $0x8] sm:$0xff]  ;;  %v194_v8 = vld [vmem:[%s710_s25 + $0x58] sm:$0xff]  ;;  %v245_v9 = vmul.f32 %v192_v2, %v192_v2  ;;  %v246_v16 = vmul.f32 %v193_v3, %v193_v3 }
  0x47   : > { %v185_v10 = vld [vmem:[%s710_s25 + $0x10] sm:$0xff]  ;;  %v203_v11 = vadd.f32 %v184_v7, %v183_v6  ;;  %v236_v12 = vmul.f32 %v183_v6, %v183_v6  ;;  %v237_v13 = vmul.f32 %v184_v7, %v184_v7  ;;  %v195_v14 = vld [vmem:[%s710_s25 + $0x60] sm:$0xff]  ;;  %v186_v17 = vld [vmem:[%s710_s25 + $0x18] sm:$0xff]  ;;  %v247_v52 = vmul.f32 %v194_v8, %v194_v8 }
  0x48   : > { %v214_v15 = vadd.f32 %v213_v4, %v193_v3  ;;  %v238_v18 = vmul.f32 %v185_v10, %v185_v10  ;;  %v196_v19 = vld [vmem:[%s710_s25 + $0x68] sm:$0xff]  ;;  %v197_v20 = vld [vmem:[%s710_s25 + $0x70] sm:$0xff]  ;;  %v248_v21 = vmul.f32 %v195_v14, %v195_v14  ;;  %v187_v24 = vld [vmem:[%s710_s25 + $0x20] sm:$0xff]  ;;  %v239_v35 = vmul.f32 %v186_v17, %v186_v17 }
  0x49   : > { %v204_v22 = vadd.f32 %v203_v11, %v185_v10  ;;  %v218_v23 = vadd.f32 %v196_v19, %v195_v14  ;;  %v188_v25 = vld [vmem:[%s710_s25 + $0x28] sm:$0xff]  ;;  %v189_v26 = vld [vmem:[%s710_s25 + $0x30] sm:$0xff]  ;;  %v252_v27 = vadd.f32 %v237_v13, %v236_v12  ;;  %v249_v28 = vmul.f32 %v196_v19, %v196_v19  ;;  %v198_v30 = vld [vmem:[%s710_s25 + $0x78] sm:$0xff] }
  0x4a   : > { %v215_v29 = vadd.f32 %v214_v15, %v194_v8  ;;  %v208_v31 = vadd.f32 %v188_v25, %v187_v24  ;;  %v240_v32 = vmul.f32 %v187_v24, %v187_v24  ;;  %v241_v33 = vmul.f32 %v188_v25, %v188_v25  ;;  %v190_v37 = vld [vmem:[%s710_s25 + $0x38] sm:$0xff]  ;;  %v201_v57 = vld [vmem:[%s903_s1 + $0x10] sm:$0xff]  ;;  %v199_v58 = vld [vmem:[%s903_s1] sm:$0xff] }
  0x4b   : > { %v205_v34 = vadd.f32 %v204_v22, %v186_v17  ;;  %v219_v36 = vadd.f32 %v218_v23, %v197_v20  ;;  %v242_v38 = vmul.f32 %v189_v26, %v189_v26  ;;  %v243_v40 = vmul.f32 %v190_v37, %v190_v37  ;;  %v202_v63 = vld [vmem:[%s903_s1 + $0x18] sm:$0xff]  ;;  %v200_v0 = vld [vmem:[%s903_s1 + $0x8] sm:$0xff]  ;;  %v232_v6 = vld [vmem:[%s904_s2] sm:$0xff] }
  0x4c   : > { %216 = vadd.xlane.f32.xlu1 %v215_v29  ;;  %v209_v39 = vadd.f32 %v208_v31, %v189_v26  ;;  %v257_v41 = vadd.f32 %v241_v33, %v240_v32  ;;  %v250_v42 = vmul.f32 %v197_v20, %v197_v20  ;;  %v253_v44 = vadd.f32 %v252_v27, %v238_v18  ;;  %v235_v11 = vld [vmem:[%s904_s2 + $0x18] sm:$0xff]  ;;  %v234_v12 = vld [vmem:[%s904_s2 + $0x10] sm:$0xff] }
  0x4d   : > { %206 = vadd.xlane.f32.xlu0 %v205_v34  ;;  %v220_v43 = vadd.f32 %v219_v36, %v198_v30  ;;  %v267_v45 = vadd.f32 %v249_v28, %v248_v21  ;;  %v262_v46 = vadd.f32 %v245_v9, %v244_v5  ;;  %v251_v50 = vmul.f32 %v198_v30, %v198_v30  ;;  %v233_v5 = vld [vmem:[%s904_s2 + $0x8] sm:$0xff] }
  0x4e   : > { %v210_v47 = vadd.f32 %v209_v39, %v190_v37  ;;  %v258_v48 = vadd.f32 %v257_v41, %v242_v38  ;;  %v254_v53 = vadd.f32 %v253_v44, %v239_v35 }
  0x4f   : > { %v268_v51 = vadd.f32 %v267_v45, %v250_v42  ;;  %v263_v54 = vadd.f32 %v262_v46, %v246_v16 }
  0x50   : > { %221 = vadd.xlane.f32.xlu1 %v220_v43  ;;  %v259_v49 = vadd.f32 %v258_v48, %v243_v40 }
  0x51   : > { %211 = vadd.xlane.f32.xlu0 %v210_v47  ;;  %v269_v55 = vadd.f32 %v268_v51, %v251_v50  ;;  %v264_v56 = vadd.f32 %v263_v54, %v247_v52 }
  0x54   : > { %260 = vadd.xlane.f32.xlu1 %v259_v49 }
  0x55   : > { %255 = vadd.xlane.f32.xlu0 %v254_v53 }
  0x58   : > { %270 = vadd.xlane.f32.xlu1 %v269_v55 }
  0x59   : > { %265 = vadd.xlane.f32.xlu0 %v264_v56 }
  0xd9   : > { %v217_v59 = vpop.xlane.xlu1 %216 }
  0xda   : > { %v225_v60 = vadd.f32 %v217_v59, %v201_v57  ;;  %v207_v61 = vpop.xlane.xlu0 %206 }
  0xdb   : > { %v223_v62 = vadd.f32 %v207_v61, %v199_v58 }
  0xdc   : > { %230 = vst.msk [vmem:[%s903_s1 + $0x10] sm:$0xff] %vm227_vm1, %v225_v60 }
  0xdd   : > { %228 = vst.msk [vmem:[%s903_s1] sm:$0xff] %vm227_vm1, %v223_v62  ;;  %v222_v1 = vpop.xlane.xlu1 %221 }
  0xde   : > { %v226_v2 = vadd.f32 %v222_v1, %v202_v63  ;;  %v212_v3 = vpop.xlane.xlu0 %211 }
  0xdf   : > { %v224_v4 = vadd.f32 %v212_v3, %v200_v0 }
  0xe0   : > { %231 = vst.msk [vmem:[%s903_s1 + $0x18] sm:$0xff] %vm227_vm1, %v226_v2 }
  0xe1   : > { %229 = vst.msk [vmem:[%s903_s1 + $0x8] sm:$0xff] %vm227_vm1, %v224_v4  ;;  %v261_v7 = vpop.xlane.xlu1 %260 }
  0xe2   : > { %v273_v8 = vadd.f32 %v261_v7, %v233_v5  ;;  %v256_v9 = vpop.xlane.xlu0 %255 }
  0xe3   : > { %v272_v10 = vadd.f32 %v256_v9, %v232_v6  ;;  %281 = sbr.rel (%p720_p11) target bundleno = 260 (0x104), region = 36  ;;  %v284_v19 = vld [vmem:[%s903_s1 + $0x10] sm:$0xff] (!%p720_p11) }
  0xe4   : > { %277 = vst.msk [vmem:[%s904_s2 + $0x8] sm:$0xff] %vm227_vm1, %v273_v8  ;;  %v282_v17 = vld [vmem:[%s903_s1] sm:$0xff] (!%p720_p11)  ;;  %v288_v22 = vmul.f32 (!%p720_p11), 0.00048828125, %v284_v19 }
  0xe5   : > { %276 = vst.msk [vmem:[%s904_s2] sm:$0xff] %vm227_vm1, %v272_v10  ;;  %v271_v13 = vpop.xlane.xlu1 %270  ;;  %v286_v20 = vmul.f32 (!%p720_p11), 0.00048828125, %v282_v17 }
  0xe6   : > { %v275_v14 = vadd.f32 %v271_v13, %v235_v11  ;;  %v266_v15 = vpop.xlane.xlu0 %265  ;;  %v300_v33 = vmul.f32 (!%p720_p11), %v288_v22, %v288_v22  ;;  %308 = vst.msk [vmem:[%s903_s1 + $0x10] sm:$0xff] (!%p720_p11), %vm227_vm1, %v288_v22 }
  0xe7   : > { %v274_v16 = vadd.f32 %v266_v15, %v234_v12  ;;  %v285_v23 = vld [vmem:[%s903_s1 + $0x18] sm:$0xff] (!%p720_p11)  ;;  %v298_v31 = vmul.f32 (!%p720_p11), %v286_v20, %v286_v20  ;;  %306 = vst.msk [vmem:[%s903_s1] sm:$0xff] (!%p720_p11), %vm227_vm1, %v286_v20 }
  0xe8   : > { %279 = vst.msk [vmem:[%s904_s2 + $0x18] sm:$0xff] %vm227_vm1, %v275_v14  ;;  %v283_v18 = vld [vmem:[%s903_s1 + $0x8] sm:$0xff] (!%p720_p11)  ;;  %v289_v26 = vmul.f32 (!%p720_p11), 0.00048828125, %v285_v23 }
  0xe9   : > { %278 = vst.msk [vmem:[%s904_s2 + $0x10] sm:$0xff] %vm227_vm1, %v274_v16  ;;  %v287_v21 = vmul.f32 (!%p720_p11), 0.00048828125, %v283_v18 }
  0xea   : > { %v301_v35 = vmul.f32 %v289_v26, %v289_v26  ;;  %309 = vst.msk [vmem:[%s903_s1 + $0x18] sm:$0xff] %vm227_vm1, %v289_v26 }
  0xeb   : > { %v291_v25 = vld [vmem:[%s904_s2 + $0x8] sm:$0xff]  ;;  %v299_v32 = vmul.f32 %v287_v21, %v287_v21  ;;  %307 = vst.msk [vmem:[%s903_s1 + $0x8] sm:$0xff] %vm227_vm1, %v287_v21 }
  0xec   : > { %v290_v24 = vld [vmem:[%s904_s2] sm:$0xff]  ;;  %v295_v28 = vmul.f32 0.00048828125, %v291_v25 }
  0xed   : > { %v294_v27 = vmul.f32 0.00048828125, %v290_v24 }
  0xee   : > { %v303_v38 = vsub.f32 %v295_v28, %v299_v32 }
  0xef   : > { %v293_v30 = vld [vmem:[%s904_s2 + $0x18] sm:$0xff]  ;;  %v302_v37 = vsub.f32 %v294_v27, %v298_v31 }
  0xf0   : > { %v292_v29 = vld [vmem:[%s904_s2 + $0x10] sm:$0xff]  ;;  %v297_v36 = vmul.f32 0.00048828125, %v293_v30  ;;  %v311_v42 = vadd.f32 1e-05, %v303_v38 }
  0xf1   : > { %v296_v34 = vmul.f32 0.00048828125, %v292_v29  ;;  %v310_v41 = vadd.f32 1e-05, %v302_v37 }
  0xf2   : > { %v305_v40 = vsub.f32 %v297_v36, %v301_v35 }
  0xf3   : > { %v304_v39 = vsub.f32 %v296_v34, %v300_v33  ;;  %468 = vrsqrt.f32 %v310_v41 }
  0xf4   : > { %v313_v44 = vadd.f32 1e-05, %v305_v40  ;;  %470 = vrsqrt.f32 %v311_v42 }
  0xf5   : > { %v312_v43 = vadd.f32 1e-05, %v304_v39 }
  0xf7   : > { %472 = vrsqrt.f32 %v312_v43 }
  0xf8   : > { %474 = vrsqrt.f32 %v313_v44 }
  0xfd   : > { %v469_v45 = vpop.eup %468 }
  0xfe   : > { %v471_v46 = vpop.eup %470  ;;  %318 = vst.msk [vmem:[%s904_s2] sm:$0xff] %vm227_vm1, %v469_v45 }
  0xff   : > { %319 = vst.msk [vmem:[%s904_s2 + $0x8] sm:$0xff] %vm227_vm1, %v471_v46 }
 0x101   : > { %v473_v47 = vpop.eup %472 }
 0x102   : > { %v475_v48 = vpop.eup %474  ;;  %320 = vst.msk [vmem:[%s904_s2 + $0x10] sm:$0xff] %vm227_vm1, %v473_v47 }
 0x103   : > { %321 = vst.msk [vmem:[%s904_s2 + $0x18] sm:$0xff] %vm227_vm1, %v475_v48 }
 0x104 PF: > { %s16_s16 = sadd.s32 1, %s572_s16   ;;  %s909_s9 = smov %s548_s10 }
 0x105   : > { %p13_p7 = scmp.ge.s32.totalorder %s16_s16, 6   ;;  %s910_s10 = smov %s552_s11 }
 0x106   : > { %s911_s11 = smov %s661_s29  ;;  %s912_s12 = smov %s564_s14 }
 0x107   : > { %s913_s13 = smov %s568_s15  ;;  %s914_s14 = smov %s917_s18 }
 0x108   : > { %s915_s15 = smov %s921_s19  ;;  %15 = sbr.rel (!%p13_p7) target bundleno = 5 (0x5), region = 76 }
 0x10f   :  { %339 = vsyncpa [#allocation3], 1 }
 0x110   :  { %341 = vsyncpa [#allocation3 + $0x1], 1 }

</bundles_post_ra>
